<compile_context>
chip_gen: v6e
topology: v6e:2x2x1
jax: 0.10.0
libtpu: 0.0.40
codegen_flags: <defaults>
</compile_context>

<pallas_src>
import math

import jax
import jax.numpy as jnp
from jax import lax
from jax.experimental import pallas as pl
from jax.experimental.pallas import tpu as pltpu

VMEM_LIMIT_BYTES = 32 * 1024 * 1024   # fits v5e/v6e (128 MiB) and v7x (64 MiB) physical
_LN_EPS = 1e-5


# ----------------------------------------------------------------------------
# Tiling helpers
# ----------------------------------------------------------------------------
def _pick_tile_m(M, cin, cout_total, budget_bytes=12 * 1024 * 1024, tm_max=1024):
    """Row tile for the token (M) dimension of the projection kernels.

    Keeps double-buffered activation tiles comfortably under the scoped VMEM
    budget (conservative enough for v7x's 64 MiB physical / 32 MiB scoped).
    """
    if M <= tm_max:
        return M
    tm = tm_max
    while tm > 64 and 2 * tm * 4 * (cin + cout_total) > budget_bytes:
        tm //= 2
    return tm


# ----------------------------------------------------------------------------
# Pallas kernels / wrappers
# ----------------------------------------------------------------------------
def linear_multi_pallas(x2d, weights, biases, out_dtypes):
    """y_i = x @ W_i + b_i for every (W_i, b_i).  x is read from HBM once."""
    M, Cin = x2d.shape
    n = len(weights)
    couts = [int(w.shape[1]) for w in weights]
    tm = _pick_tile_m(M, Cin, sum(couts))
    grid = (pl.cdiv(M, tm),)

    def kernel(*refs):
        x_ref = refs[0]
        w_refs = refs[1:1 + n]
        b_refs = refs[1 + n:1 + 2 * n]
        o_refs = refs[1 + 2 * n:]
        x = x_ref[...].astype(jnp.bfloat16)                 # bf16 MXU operands
        for i in range(n):
            acc = jnp.dot(x, w_refs[i][...].astype(jnp.bfloat16),
                          preferred_element_type=jnp.float32)
            acc = acc + b_refs[i][...].astype(jnp.float32)
            o_refs[i][...] = acc.astype(o_refs[i].dtype)

    in_specs = [pl.BlockSpec((tm, Cin), lambda i: (i, 0))]
    in_specs += [pl.BlockSpec((Cin, co), lambda i: (0, 0)) for co in couts]
    in_specs += [pl.BlockSpec((1, co), lambda i: (0, 0)) for co in couts]
    out_specs = [pl.BlockSpec((tm, co), lambda i: (i, 0)) for co in couts]
    out_shape = [jax.ShapeDtypeStruct((M, co), dt) for co, dt in zip(couts, out_dtypes)]

    return pl.pallas_call(
        kernel,
        grid=grid,
        in_specs=in_specs,
        out_specs=out_specs,
        out_shape=out_shape,
        compiler_params=pltpu.CompilerParams(
            dimension_semantics=("parallel",),
            vmem_limit_bytes=VMEM_LIMIT_BYTES),
    )(x2d, *weights, *[b.reshape(1, -1) for b in biases])


def linear_ln_pallas(x2d, w, b, gamma, beta, out_dtype):
    """(x @ W + b) followed by LayerNorm over the last dim, fused in one kernel."""
    M, Cin = x2d.shape
    Cout = int(w.shape[1])
    tm = _pick_tile_m(M, Cin, Cout)
    grid = (pl.cdiv(M, tm),)

    def kernel(x_ref, w_ref, b_ref, g_ref, bb_ref, o_ref):
        acc = jnp.dot(x_ref[...].astype(jnp.bfloat16),
                      w_ref[...].astype(jnp.bfloat16),
                      preferred_element_type=jnp.float32)
        y = acc + b_ref[...].astype(jnp.float32)
        mu = jnp.mean(y, axis=-1, keepdims=True)
        var = jnp.mean((y - mu) ** 2, axis=-1, keepdims=True)
        y = (y - mu) * lax.rsqrt(var + _LN_EPS)
        y = y * g_ref[...].astype(jnp.float32) + bb_ref[...].astype(jnp.float32)
        o_ref[...] = y.astype(o_ref.dtype)

    return pl.pallas_call(
        kernel,
        grid=grid,
        in_specs=[pl.BlockSpec((tm, Cin), lambda i: (i, 0)),
                  pl.BlockSpec((Cin, Cout), lambda i: (0, 0)),
                  pl.BlockSpec((1, Cout), lambda i: (0, 0)),
                  pl.BlockSpec((1, Cout), lambda i: (0, 0)),
                  pl.BlockSpec((1, Cout), lambda i: (0, 0))],
        out_specs=pl.BlockSpec((tm, Cout), lambda i: (i, 0)),
        out_shape=jax.ShapeDtypeStruct((M, Cout), out_dtype),
        compiler_params=pltpu.CompilerParams(
            dimension_semantics=("parallel",),
            vmem_limit_bytes=VMEM_LIMIT_BYTES),
    )(x2d, w, b.reshape(1, -1), gamma.reshape(1, -1), beta.reshape(1, -1))


def attention_core_pallas(q, k, v, *, num_heads, scale, return_attn=True,
                          out_dtype=jnp.bfloat16, attn_dtype=jnp.float32,
                          tq_max=512):
    """q: (B, N, C) bf16, k/v: (B, Nk, C) bf16.

    One grid step handles all heads of a (batch, query-tile) pair; the head
    split is done in-kernel on static lane slices (no HBM transposes).  The
    query dimension is tiled so the (tq, Nk) score tile stays bounded in VMEM.
    """
    B, N, C = q.shape
    Nk = k.shape[1]
    hd = C // num_heads
    tq = N if N <= tq_max else tq_max
    grid = (B, pl.cdiv(N, tq))

    def kernel(q_ref, k_ref, v_ref, o_ref, *attn_out):
        qb = q_ref[0].astype(jnp.bfloat16)        # (tq, C)
        kb = k_ref[0].astype(jnp.bfloat16)        # (Nk, C)
        vb = v_ref[0].astype(jnp.bfloat16)        # (Nk, C)
        for h in range(num_heads):                # unrolled, stays in VMEM
            sl = slice(h * hd, (h + 1) * hd)
            # contract on the last dim of both operands -> no explicit K^T
            s = lax.dot_general(qb[:, sl], kb[:, sl],
                                (((1,), (1,)), ((), ())),
                                preferred_element_type=jnp.float32) * scale  # (tq, Nk)
            s = s - jnp.max(s, axis=-1, keepdims=True)
            e = jnp.exp(s)
            p = e * pl.reciprocal(jnp.sum(e, axis=-1, keepdims=True), approx=True)
            if return_attn:
                attn_out[0][0, h] = p.astype(attn_dtype)
            o_h = jnp.dot(p.astype(jnp.bfloat16), vb[:, sl],
                          preferred_element_type=jnp.float32)                # (tq, hd)
            o_ref[0, :, sl] = o_h.astype(o_ref.dtype)

    in_specs = [pl.BlockSpec((1, tq, C), lambda b, qi: (b, qi, 0)),
                pl.BlockSpec((1, Nk, C), lambda b, qi: (b, 0, 0)),
                pl.BlockSpec((1, Nk, C), lambda b, qi: (b, 0, 0))]
    out_specs = [pl.BlockSpec((1, tq, C), lambda b, qi: (b, qi, 0))]
    out_shape = [jax.ShapeDtypeStruct((B, N, C), out_dtype)]
    if return_attn:
        out_specs.append(
            pl.BlockSpec((1, num_heads, tq, Nk), lambda b, qi: (b, 0, qi, 0)))
        out_shape.append(
            jax.ShapeDtypeStruct((B, num_heads, N, Nk), attn_dtype))

    outs = pl.pallas_call(
        kernel,
        grid=grid,
        in_specs=in_specs,
        out_specs=out_specs,
        out_shape=out_shape,
        compiler_params=pltpu.CompilerParams(
            dimension_semantics=("parallel", "parallel"),
            vmem_limit_bytes=VMEM_LIMIT_BYTES),
    )(q, k, v)
    if return_attn:
        return outs[0], outs[1]
    return outs[0], None


# ----------------------------------------------------------------------------
# Module forward (glue = reshapes only; no HBM-side head permutes)
# ----------------------------------------------------------------------------
def _compute_qkv(x, H, W, params, num_heads, sr_ratio):
    B, N, C = x.shape
    if sr_ratio == 1:
        # fused q/k/v projection: x is read from HBM once for all three
        q, k, v = linear_multi_pallas(
            x.reshape(B * N, C),
            [params["q_w"], params["k_w"], params["v_w"]],
            [params["q_b"], params["k_b"], params["v_b"]],
            out_dtypes=[jnp.bfloat16] * 3)
        return q.reshape(B, N, C), k.reshape(B, N, C), v.reshape(B, N, C)

    sr = sr_ratio
    (q,) = linear_multi_pallas(x.reshape(B * N, C),
                               [params["q_w"]], [params["q_b"]],
                               out_dtypes=[jnp.bfloat16])
    q = q.reshape(B, N, C)

    # stride-sr Conv2d (kernel == stride) == space-to-depth + matmul;
    # LayerNorm is fused into the same kernel as an epilogue.
    Ho, Wo = H // sr, W // sr
    Nk = Ho * Wo
    xs = x.reshape(B, Ho, sr, Wo, sr, C).transpose(0, 1, 3, 2, 4, 5)
    xs = xs.reshape(B * Nk, sr * sr * C)
    xs = linear_ln_pallas(xs, params["sr_w"], params["sr_b"],
                          params["ln_g"], params["ln_b"], out_dtype=jnp.bfloat16)

    # kv projection split into k / v outputs so the attention kernel gets
    # lane-clean (B, Nk, C) blocks without any channel re-slicing in HBM.
    k, v = linear_multi_pallas(xs,
                               [params["k_w"], params["v_w"]],
                               [params["k_b"], params["v_b"]],
                               out_dtypes=[jnp.bfloat16] * 2)
    return q, k.reshape(B, Nk, C), v.reshape(B, Nk, C)


def _attn_block(q, k, v, params, num_heads, scale, return_attn=True):
    B, N, C = q.shape
    out, attn = attention_core_pallas(q, k, v, num_heads=num_heads, scale=scale,
                                      return_attn=return_attn)
    (x_out,) = linear_multi_pallas(out.reshape(B * N, C),
                                   [params["proj_w"]], [params["proj_b"]],
                                   out_dtypes=[jnp.float32])
    return x_out.reshape(B, N, C), attn


def attention_forward(x, H, W, params, num_heads, sr_ratio,
                      x_cd=None, switch_element="q"):
    B, N, C = x.shape
    hd = C // num_heads
    scale = hd ** (-0.5)
    # TODO(synk): attn_drop / proj_drop are identity in eval mode; the
    # training-only stochastic attn_noise branch is not implemented.

    q_x, k_x, v_x = _compute_qkv(x, H, W, params, num_heads, sr_ratio)
    x_out, attn_x = _attn_block(q_x, k_x, v_x, params, num_heads, scale)
    if x_cd is None:
        return x_out, attn_x

    q_cd, k_cd, v_cd = _compute_qkv(x_cd, H, W, params, num_heads, sr_ratio)
    x_cd_out, attn_x_cd = _attn_block(q_cd, k_cd, v_cd, params, num_heads, scale)

    se = switch_element.lower()
    q_t2s, q_s2t = (q_cd, q_x) if "q" in se else (q_x, q_cd)
    k_t2s, k_s2t = (k_cd, k_x) if "k" in se else (k_x, k_cd)
    v_t2s, v_s2t = (v_cd, v_x) if "v" in se else (v_x, v_cd)

    t2s_out, attn_t2s = _attn_block(q_t2s, k_t2s, v_t2s, params, num_heads, scale)
    s2t_out, attn_s2t = _attn_block(q_s2t, k_s2t, v_s2t, params, num_heads, scale)
    return (x_out, x_cd_out, t2s_out, s2t_out,
            attn_x, attn_x_cd, attn_t2s, attn_s2t)


# ----------------------------------------------------------------------------
# Deterministic parameter init (synthetic; no checkpoint load)
# ----------------------------------------------------------------------------
def make_params(key, dim, sr_ratio, qkv_bias=False, dtype=jnp.float32):
    ks = jax.random.split(key, 8)

    def init(k, shape, fan_in):
        bound = 1.0 / math.sqrt(fan_in)
        return jax.random.uniform(k, shape, dtype, -bound, bound)

    p = {}
    # nn.Linear stores weight as (out, in); we store transposed (in, out).
    p["q_w"] = init(ks[0], (dim, dim), dim)
    p["q_b"] = init(ks[1], (dim,), dim) if qkv_bias else jnp.zeros((dim,), dtype)
    kv_w = init(ks[2], (dim, 2 * dim), dim)
    kv_b = init(ks[3], (2 * dim,), dim) if qkv_bias else jnp.zeros((2 * dim,), dtype)
    # PyTorch kv layout: first C output channels = k, next C = v.
    p["k_w"], p["v_w"] = kv_w[:, :dim], kv_w[:, dim:]
    p["k_b"], p["v_b"] = kv_b[:dim], kv_b[dim:]
    p["proj_w"] = init(ks[4], (dim, dim), dim)
    p["proj_b"] = init(ks[5], (dim,), dim)
    if sr_ratio > 1:
        # Conv2d weight (Cout, Cin, kh, kw) -> (kh*kw*Cin, Cout) matching the
        # (kh, kw, Cin) patch flatten order used in _compute_qkv.
        fan = dim * sr_ratio * sr_ratio
        w_conv = init(ks[6], (dim, dim, sr_ratio, sr_ratio), fan)
        p["sr_w"] = jnp.transpose(w_conv, (2, 3, 1, 0)).reshape(fan, dim)
        p["sr_b"] = init(ks[7], (dim,), fan)
        p["ln_g"] = jnp.ones((dim,), dtype)
        p["ln_b"] = jnp.zeros((dim,), dtype)
    return p


# ----------------------------------------------------------------------------
# Pure-JAX reference (mirrors the bf16 MXU-operand rounding; verification only)
# ----------------------------------------------------------------------------
def reference_forward(x, H, W, params, num_heads, sr_ratio):
    B, N, C = x.shape
    hd = C // num_heads
    scale = hd ** (-0.5)
    bf16 = jnp.bfloat16

    def mm(a, b):
        return jnp.dot(a.astype(bf16), b.astype(bf16),
                       preferred_element_type=jnp.float32)

    q = (mm(x.reshape(B * N, C), params["q_w"]) + params["q_b"]).astype(bf16)
    q = q.reshape(B, N, num_heads, hd)

    if sr_ratio > 1:
        sr = sr_ratio
        Ho, Wo = H // sr, W // sr
        xs = x.reshape(B, Ho, sr, Wo, sr, C).transpose(0, 1, 3, 2, 4, 5)
        xs = xs.reshape(B * Ho * Wo, sr * sr * C)
        y = mm(xs, params["sr_w"]) + params["sr_b"]
        mu = y.mean(-1, keepdims=True)
        var = ((y - mu) ** 2).mean(-1, keepdims=True)
        y = (y - mu) * jax.lax.rsqrt(var + _LN_EPS) * params["ln_g"] + params["ln_b"]
        kv_in, Nk = y.astype(bf16), Ho * Wo
    else:
        kv_in, Nk = x.reshape(B * N, C), N

    k = (mm(kv_in, params["k_w"]) + params["k_b"]).astype(bf16).reshape(
        B, Nk, num_heads, hd)
    v = (mm(kv_in, params["v_w"]) + params["v_b"]).astype(bf16).reshape(
        B, Nk, num_heads, hd)

    s = jnp.einsum("bnhd,bmhd->bhnm", q, k,
                   preferred_element_type=jnp.float32) * scale
    attn = jax.nn.softmax(s, axis=-1)
    out = jnp.einsum("bhnm,bmhd->bnhd", attn.astype(bf16), v,
                     preferred_element_type=jnp.float32)
    out = out.astype(bf16).reshape(B * N, C)
    x_out = (mm(out, params["proj_w"]) + params["proj_b"]).reshape(B, N, C)
    return x_out, attn


# ----------------------------------------------------------------------------
if __name__ == "__main__":
    key = jax.random.PRNGKey(0)

    # ---- sr_ratio > 1 (spatial-reduction path) ----
    B, H, W = 2, 8, 8
    dim, num_heads, sr_ratio = 32, 4, 2
    N = H * W
    k_x, k_xcd, k_p, k_rest = jax.random.split(key, 4)
    x = jax.random.normal(k_x, (B, N, dim), jnp.float32)
    x_cd = jax.random.normal(k_xcd, (B, N, dim), jnp.float32)
    params = make_params(k_p, dim, sr_ratio, qkv_bias=False)

    # primary path (x_cd=None): returns (x_out, attn_x)
    x_out, attn_x = attention_forward(x, H, W, params, num_heads, sr_ratio)
    jax.block_until_ready((x_out, attn_x))

    # full cross path (x_cd provided, switch_element='q')
    full = attention_forward(x, H, W, params, num_heads, sr_ratio,
                             x_cd=x_cd, switch_element="q")
    jax.block_until_ready(full)

    ref_out, ref_attn = reference_forward(x, H, W, params, num_heads, sr_ratio)
    assert x_out.shape == (B, N, dim)
    assert attn_x.shape == (B, num_heads, N, (H // sr_ratio) * (W // sr_ratio))
    assert jnp.allclose(x_out, ref_out, atol=2e-2, rtol=2e-2), \
        float(jnp.max(jnp.abs(x_out - ref_out)))
    assert jnp.allclose(attn_x, ref_attn, atol=5e-3, rtol=2e-2), \
        float(jnp.max(jnp.abs(attn_x - ref_attn)))
    assert len(full) == 8

    # ---- sr_ratio == 1 (fused q/k/v projection path) ----
    H1 = W1 = 4
    N1 = H1 * W1
    k_x1, k_p1 = jax.random.split(k_rest)
    x1 = jax.random.normal(k_x1, (B, N1, dim), jnp.float32)
    params1 = make_params(k_p1, dim, 1, qkv_bias=True)
    y1, a1 = attention_forward(x1, H1, W1, params1, num_heads, 1)
    jax.block_until_ready((y1, a1))
    r1, ra1 = reference_forward(x1, H1, W1, params1, num_heads, 1)
    assert jnp.allclose(y1, r1, atol=2e-2, rtol=2e-2), \
        float(jnp.max(jnp.abs(y1 - r1)))
    assert jnp.allclose(a1, ra1, atol=5e-3, rtol=2e-2), \
        float(jnp.max(jnp.abs(a1 - ra1)))

    print("KERNEL_OK")
</pallas_src>

<mosaic_0001>
module attributes {stable_mosaic.version = 11 : i64} {
  func.func @kernel(%arg0: i32, %arg1: memref<128x32xf32, #tpu.memory_space<vmem>>, %arg2: memref<32x32xf32, #tpu.memory_space<vmem>>, %arg3: memref<1x32xf32, #tpu.memory_space<vmem>>, %arg4: memref<128x32xbf16, #tpu.memory_space<vmem>>) attributes {dimension_semantics = [#tpu.dimension_semantics<parallel>], iteration_bounds = array<i64: 1>, scalar_prefetch = 0 : i64, scratch_operands = 0 : i64, tpu.core_type = #tpu.core_type<tc>, window_params = [{transform_indices = @transform_0, window_bounds = array<i64: 128, 32>}, {pipeline_mode = #tpu.pipeline_mode<synchronous>, transform_indices = @transform_1, window_bounds = array<i64: 32, 32>}, {pipeline_mode = #tpu.pipeline_mode<synchronous>, transform_indices = @transform_2, window_bounds = array<i64: 1, 32>}, {transform_indices = @transform_3, window_bounds = array<i64: 128, 32>}]} {
    %c0 = arith.constant 0 : index
    %c0_0 = arith.constant 0 : index
    %0 = vector.load %arg1[%c0, %c0_0] : memref<128x32xf32, #tpu.memory_space<vmem>>, vector<128x32xf32>
    %1 = arith.truncf %0 : vector<128x32xf32> to vector<128x32xbf16>
    %c0_1 = arith.constant 0 : index
    %c0_2 = arith.constant 0 : index
    %2 = vector.load %arg2[%c0_1, %c0_2] : memref<32x32xf32, #tpu.memory_space<vmem>>, vector<32x32xf32>
    %3 = arith.truncf %2 : vector<32x32xf32> to vector<32x32xbf16>
    %cst = arith.constant dense<0.000000e+00> : vector<128x32xf32>
    %4 = tpu.matmul %1, %3, %cst {dimension_numbers = #tpu.dot_dimension_numbers<[1], [0], [0], [1], [0, 0, 1, 1], [], []>} : vector<128x32xbf16>, vector<32x32xbf16>, vector<128x32xf32> -> vector<128x32xf32>
    %c0_3 = arith.constant 0 : index
    %c0_4 = arith.constant 0 : index
    %5 = vector.load %arg3[%c0_3, %c0_4] : memref<1x32xf32, #tpu.memory_space<vmem>>, vector<1x32xf32>
    %6 = vector.broadcast %5 : vector<1x32xf32> to vector<128x32xf32>
    %7 = arith.addf %4, %6 : vector<128x32xf32>
    %8 = arith.truncf %7 : vector<128x32xf32> to vector<128x32xbf16>
    %c0_5 = arith.constant 0 : index
    %c0_6 = arith.constant 0 : index
    %9 = vector.load %arg4[%c0_5, %c0_6] : memref<128x32xbf16, #tpu.memory_space<vmem>>, vector<128x32xbf16>
    tpu.vector_store %arg4[%c0_5, %c0_6], %8 {strides = array<i32>} : memref<128x32xbf16, #tpu.memory_space<vmem>>, vector<128x32xbf16>,
    return
  }
  func.func @transform_0(%arg0: i32) -> (i32, i32) {
    %c0_i32 = arith.constant 0 : i32
    %c0_i32_0 = arith.constant 0 : i32
    return %arg0, %c0_i32 : i32, i32
  }
  func.func @transform_1(%arg0: i32) -> (i32, i32) {
    %c0_i32 = arith.constant 0 : i32
    %c0_i32_0 = arith.constant 0 : i32
    %c0_i32_1 = arith.constant 0 : i32
    return %c0_i32, %c0_i32_0 : i32, i32
  }
  func.func @transform_2(%arg0: i32) -> (i32, i32) {
    %c0_i32 = arith.constant 0 : i32
    %c0_i32_0 = arith.constant 0 : i32
    %c0_i32_1 = arith.constant 0 : i32
    return %c0_i32, %c0_i32_0 : i32, i32
  }
  func.func @transform_3(%arg0: i32) -> (i32, i32) {
    %c0_i32 = arith.constant 0 : i32
    %c0_i32_0 = arith.constant 0 : i32
    return %arg0, %c0_i32 : i32, i32
  }
}

</mosaic_0001>

<bundles_post_ra>
// kernel: tpu_custom_call.1
= control target key start
LH: loop header
LB: loop body
LE: loop exit
PB: predicated region body
PF: predicated region fallthrough
CT: control target
= control target key end

     0   :  { %vm52_vm0 = vcmask 261120   ;;  %vm238_vm1 = vcmask 257024   ;;  %s489_s1 = inlined_call_operand.vmem [shape: f32[32,32], index: 1, kind: input, shape index: {}]   ;;  %s490_s0 = inlined_call_operand.vmem [shape: f32[128,32], index: 0, kind: input, shape index: {}]   ;;  %s491_s2 = inlined_call_operand.vmem [shape: f32[1,32], index: 2, kind: input, shape index: {}]   ;;  %s492_s3 = inlined_call_operand.vmem [shape: bf16[128,32], index: 3, kind: output, shape index: {}]  }
   0x1   :  { %v41_v0 = vld [vmem:[%s489_s1 + $0x10] sm:$0xff]  ;;  %v42_v1 = vld [vmem:[%s489_s1 + $0x18] sm:$0xff]  ;;  %v39_v2 = vld [vmem:[%s489_s1] sm:$0xff] }
   0x2   :  { %v44_v3 = vpack.c.bf16 %v42_v1, %v41_v0  ;;  %v40_v4 = vld [vmem:[%s489_s1 + $0x8] sm:$0xff]  ;;  %v15_v5 = vld [vmem:[%s490_s0] sm:$0xff]  ;;  %v17_v12 = vld [vmem:[%s490_s0 + $0x10] sm:$0xff] }
   0x3   :  { %v16_v6 = vld [vmem:[%s490_s0 + $0x8] sm:$0xff]  ;;  %v43_v7 = vpack.c.bf16 %v40_v4, %v39_v2  ;;  %v23_v9 = vld [vmem:[%s490_s0 + $0x40] sm:$0xff]  ;;  %v18_v13 = vld [vmem:[%s490_s0 + $0x18] sm:$0xff] }
   0x4   :  { %v31_v8 = vpack.c.bf16 %v16_v6, %v15_v5  ;;  %v24_v10 = vld [vmem:[%s490_s0 + $0x48] sm:$0xff]  ;;  %310 = vmatprep.subr.bf16.mxu0 %v44_v3  ;;  %330 = vmatprep.subr.bf16.mxu1 %v44_v3  ;;  %v25_v14 = vld [vmem:[%s490_s0 + $0x50] sm:$0xff]  ;;  %v26_v15 = vld [vmem:[%s490_s0 + $0x58] sm:$0xff]  ;;  %v32_v20 = vpack.c.bf16 %v18_v13, %v17_v12 }
   0x5   :  { %v35_v11 = vpack.c.bf16 %v24_v10, %v23_v9  ;;  %311 = vmatpush3.bf16.msra.mxu0 %v44_v3  ;;  %332 = vmatpush3.bf16.msra.mxu1 %v44_v3  ;;  %v19_v16 = vld [vmem:[%s490_s0 + $0x20] sm:$0xff]  ;;  %v20_v17 = vld [vmem:[%s490_s0 + $0x28] sm:$0xff]  ;;  %v36_v21 = vpack.c.bf16 %v26_v15, %v25_v14  ;;  %v21_v24 = vld [vmem:[%s490_s0 + $0x30] sm:$0xff] }
   0x6   :  { %312 = vmatprep.subr.bf16.mxu0 %v43_v7  ;;  %331 = vmatprep.subr.bf16.mxu1 %v43_v7  ;;  %v27_v18 = vld [vmem:[%s490_s0 + $0x60] sm:$0xff]  ;;  %v28_v19 = vld [vmem:[%s490_s0 + $0x68] sm:$0xff]  ;;  %v33_v22 = vpack.c.bf16 %v20_v17, %v19_v16  ;;  %v22_v25 = vld [vmem:[%s490_s0 + $0x38] sm:$0xff] }
   0x7   :  { %314 = vmatprep.mubr.msk.bf16.mxu0 %vm52_vm0, %v31_v8  ;;  %322 = vmatprep.mubr.msk.bf16.mxu1 %vm52_vm0, %v35_v11  ;;  %v37_v23 = vpack.c.bf16 %v28_v19, %v27_v18  ;;  %v29_v26 = vld [vmem:[%s490_s0 + $0x70] sm:$0xff]  ;;  %v30_v27 = vld [vmem:[%s490_s0 + $0x78] sm:$0xff]  ;;  %v34_v28 = vpack.c.bf16 %v22_v25, %v21_v24  ;;  %v259_v30 = vld [vmem:[%s491_s2] ss:$0 sm:$0xff] }
   0x8   :  { %v38_v29 = vpack.c.bf16 %v30_v27, %v29_v26 }
   0x9   :  { %313 = vmatpush3.bf16.msra.mxu0 %v43_v7  ;;  %333 = vmatpush3.bf16.msra.mxu1 %v43_v7 }
   0xc   :  { %315 = vmatmul.mubr.msk.bf16.vlgmr.msra.gmra.mxu0 %vm52_vm0, %v32_v20  ;;  %323 = vmatmul.mubr.msk.bf16.vlgmr.msra.gmra.mxu1 %vm52_vm0, %v36_v21 }
   0xd   :  { %318 = vmatprep.mubr.msk.bf16.mxu0 %vm52_vm0, %v33_v22  ;;  %326 = vmatprep.mubr.msk.bf16.mxu1 %vm52_vm0, %v37_v23 }
  0x14   :  { %319 = vmatmul.mubr.msk.bf16.gmra.mxu0 %vm52_vm0, %v34_v28  ;;  %327 = vmatmul.mubr.msk.bf16.gmra.mxu1 %vm52_vm0, %v38_v29 }
  0xcc   :  { %v316_v31 = vpop.f32.mrf.mxu0  ;;  %v324_v32 = vpop.f32.mrf.mxu1 }
  0xcd   :  { %v120_v33 = vadd.f32 %v316_v31, %v259_v30  ;;  %v152_v34 = vadd.f32 %v324_v32, %v259_v30 }
  0xce   :  { %v111_v35 = vpop.f32.mrf.mxu0  ;;  %v143_v36 = vpop.f32.mrf.mxu1 }
  0xcf   :  { %v286_v37 = vpack.c.bf16 %v120_v33, %v120_v33  ;;  %v294_v38 = vpack.c.bf16 %v152_v34, %v152_v34  ;;  %v112_v39 = vadd.f32 %v259_v30, %v111_v35  ;;  %v144_v40 = vadd.f32 %v259_v30, %v143_v36 }
  0xd0   :  { %v317_v41 = vpop.f32.mrf.mxu0  ;;  %v325_v42 = vpop.f32.mrf.mxu1 }
  0xd1   :  { %241 = vst.msk [vmem:[%s492_s3 + $0x8] sm:$0xf] %vm238_vm1, %v286_v37  ;;  %249 = vst.msk [vmem:[%s492_s3 + $0x28] sm:$0xf] %vm238_vm1, %v294_v38  ;;  %v284_v43 = vpack.c.bf16 %v112_v39, %v112_v39  ;;  %v292_v44 = vpack.c.bf16 %v144_v40, %v144_v40  ;;  %v123_v45 = vadd.f32 %v317_v41, %v259_v30 }
  0xd2   :  { %v155_v46 = vadd.f32 %v325_v42, %v259_v30  ;;  %v114_v47 = vpop.f32.mrf.mxu0  ;;  %v146_v48 = vpop.f32.mrf.mxu1 }
  0xd3   :  { %239 = vst.msk [vmem:[%s492_s3] sm:$0xf] %vm238_vm1, %v284_v43  ;;  %247 = vst.msk [vmem:[%s492_s3 + $0x20] sm:$0xf] %vm238_vm1, %v292_v44  ;;  %v287_v49 = vpack.c.bf16 %v123_v45, %v123_v45  ;;  %v115_v51 = vadd.f32 %v259_v30, %v114_v47  ;;  %v147_v52 = vadd.f32 %v259_v30, %v146_v48 }
  0xd4   :  { %v295_v50 = vpack.c.bf16 %v155_v46, %v155_v46  ;;  %v320_v53 = vpop.f32.mrf.mxu0  ;;  %v328_v54 = vpop.f32.mrf.mxu1 }
  0xd5   :  { %242 = vst.msk [vmem:[%s492_s3 + $0xc] sm:$0xf] %vm238_vm1, %v287_v49  ;;  %v285_v55 = vpack.c.bf16 %v115_v51, %v115_v51  ;;  %v293_v56 = vpack.c.bf16 %v147_v52, %v147_v52  ;;  %v136_v57 = vadd.f32 %v320_v53, %v259_v30  ;;  %v168_v58 = vadd.f32 %v328_v54, %v259_v30 }
  0xd6   :  { %250 = vst.msk [vmem:[%s492_s3 + $0x2c] sm:$0xf] %vm238_vm1, %v295_v50  ;;  %v127_v59 = vpop.f32.mrf.mxu0  ;;  %v159_v60 = vpop.f32.mrf.mxu1 }
  0xd7   :  { %240 = vst.msk [vmem:[%s492_s3 + $0x4] sm:$0xf] %vm238_vm1, %v285_v55  ;;  %248 = vst.msk [vmem:[%s492_s3 + $0x24] sm:$0xf] %vm238_vm1, %v293_v56  ;;  %v290_v61 = vpack.c.bf16 %v136_v57, %v136_v57  ;;  %v298_v62 = vpack.c.bf16 %v168_v58, %v168_v58  ;;  %v128_v63 = vadd.f32 %v259_v30, %v127_v59 }
  0xd8   :  { %v160_v0 = vadd.f32 %v259_v30, %v159_v60  ;;  %v321_v1 = vpop.f32.mrf.mxu0  ;;  %v329_v2 = vpop.f32.mrf.mxu1 }
  0xd9   :  { %245 = vst.msk [vmem:[%s492_s3 + $0x18] sm:$0xf] %vm238_vm1, %v290_v61  ;;  %253 = vst.msk [vmem:[%s492_s3 + $0x38] sm:$0xf] %vm238_vm1, %v298_v62  ;;  %v288_v3 = vpack.c.bf16 %v128_v63, %v128_v63  ;;  %v139_v5 = vadd.f32 %v321_v1, %v259_v30  ;;  %v171_v6 = vadd.f32 %v329_v2, %v259_v30 }
  0xda   :  { %v296_v4 = vpack.c.bf16 %v160_v0, %v160_v0  ;;  %v130_v7 = vpop.f32.mrf.mxu0  ;;  %v162_v8 = vpop.f32.mrf.mxu1 }
  0xdb   :  { %243 = vst.msk [vmem:[%s492_s3 + $0x10] sm:$0xf] %vm238_vm1, %v288_v3  ;;  %v291_v9 = vpack.c.bf16 %v139_v5, %v139_v5  ;;  %v299_v10 = vpack.c.bf16 %v171_v6, %v171_v6  ;;  %v131_v11 = vadd.f32 %v259_v30, %v130_v7  ;;  %v163_v12 = vadd.f32 %v259_v30, %v162_v8 }
  0xdc   :  { %251 = vst.msk [vmem:[%s492_s3 + $0x30] sm:$0xf] %vm238_vm1, %v296_v4 }
  0xdd   :  { %246 = vst.msk [vmem:[%s492_s3 + $0x1c] sm:$0xf] %vm238_vm1, %v291_v9  ;;  %254 = vst.msk [vmem:[%s492_s3 + $0x3c] sm:$0xf] %vm238_vm1, %v299_v10  ;;  %v289_v13 = vpack.c.bf16 %v131_v11, %v131_v11  ;;  %v297_v14 = vpack.c.bf16 %v163_v12, %v163_v12 }
  0xdf   :  { %244 = vst.msk [vmem:[%s492_s3 + $0x14] sm:$0xf] %vm238_vm1, %v289_v13  ;;  %252 = vst.msk [vmem:[%s492_s3 + $0x34] sm:$0xf] %vm238_vm1, %v297_v14 }

</bundles_post_ra>
